<compile_context>
chip_gen: v6e
topology: v6e:2x2x1
jax: 0.10.0
libtpu: 0.0.40
codegen_flags: <defaults>
</compile_context>

<pallas_src>
import functools

import jax
import jax.numpy as jnp
from jax import lax
from jax.experimental import pallas as pl
from jax.experimental.pallas import tpu as pltpu


# ----------------------------- Pallas kernel --------------------------------
def _make_kernel(K, Cin, Ho, Wo, KD, KD_pad):
    KH = K // 2  # half-kernel extent in the stride-2 split layout

    def kernel(x_ref, w_ref, b_ref, o_ref, patch_scr):
        # x_ref:     (Hp2, 2, Wp2, 2*Cin)  bf16  split layout of padded NHWC sample
        # w_ref:     (Cout, KD_pad)        bf16  flattened conv weight (zero-padded)
        # b_ref:     (Cout, 1)             f32
        # o_ref:     (1, Cout, Ho*Wo)      f32   NCHW output, spatial flattened
        # patch_scr: (Ho, Wo, KD_pad)      f32   im2col patch tile (VMEM scratch)

        # Zero only the contraction-padding columns.  Done every step so
        # correctness never depends on scratch state (megacore-safe); all live
        # columns are fully overwritten below.
        if KD_pad > KD:
            patch_scr[:, :, KD:KD_pad] = jnp.zeros((Ho, Wo, KD_pad - KD), jnp.float32)

        xv = x_ref[...]                                   # (Hp2, 2, Wp2, 2*Cin)

        # Fused im2col.  With kh = 2a+dh, kw = 2s+dw:
        #   x_pad[n, 2*ho+kh, 2*wo+kw, c] == xv[ho+a, dh, wo+s, dw*Cin + c]
        # so one (a, dh, s) slab covers BOTH dw taps: K*K/2 copies of width
        # 2*Cin, landing at column (kh*K + kw)*Cin -- weight order unchanged.
        for a in range(KH):
            for dh in range(2):
                for s in range(KH):
                    col = ((2 * a + dh) * K + 2 * s) * Cin
                    slab = xv[a:a + Ho, dh, s:s + Wo, :]          # (Ho, Wo, 2*Cin)
                    patch_scr[:, :, col:col + 2 * Cin] = slab.astype(jnp.float32)

        # (Ho, Wo, KD_pad) -> (Ho*Wo, KD_pad): leading-dim collapse, tile-aligned
        # for f32 (Wo multiple of 8, KD_pad multiple of 128) -> free.
        patches = patch_scr[...].reshape(Ho * Wo, KD_pad).astype(jnp.bfloat16)

        # Single MXU matmul, bf16 operands, f32 accumulation, contracting the
        # minor (KD_pad) dims of both operands -> (Cout, Ho*Wo).
        acc = lax.dot_general(
            w_ref[...], patches,
            dimension_numbers=(((1,), (1,)), ((), ())),
            preferred_element_type=jnp.float32)

        acc = acc + b_ref[...]                            # bias (f32, broadcast on lanes)
        # norm = Identity, activation = ReLU; lane-dense store (last dim = Ho*Wo).
        o_ref[0] = jnp.maximum(acc, 0.0).astype(o_ref.dtype)

    return kernel


# ----------------------------- Module wrapper --------------------------------
@functools.partial(jax.jit, static_argnames=("kernel_size", "stride", "padding"))
def conv2d_block_forward(x_nchw, weight, bias, *, kernel_size=4, stride=2, padding=1):
    """Conv2dBlock.forward (ZeroPad2d -> Conv2d(k, s=2) -> Identity -> ReLU).

    x_nchw:  (N, Cin, H, W)
    weight:  (Cout, Cin, K, K)   (PyTorch nn.Conv2d layout)
    bias:    (Cout,)
    returns: (N, Cout, Ho, Wo)   (NCHW, written directly by the kernel)
    """
    N, Cin, H, W = x_nchw.shape
    Cout, _, K, _ = weight.shape
    assert K == kernel_size
    assert stride == 2, "specialised to the module default stride=2"
    assert K % 2 == 0, "specialised to even kernel_size (module default 4)"

    if isinstance(padding, int):
        pad_l, pad_r, pad_t, pad_b = padding, padding, padding, padding
    else:  # ZeroPad2d tuple order: (left, right, top, bottom)
        pad_l, pad_r, pad_t, pad_b = padding

    Hp, Wp = H + pad_t + pad_b, W + pad_l + pad_r
    assert Hp % 2 == 0 and Wp % 2 == 0, "padded spatial dims must be even (stride 2)"
    Hp2, Wp2 = Hp // 2, Wp // 2
    Ho, Wo = (Hp - K) // 2 + 1, (Wp - K) // 2 + 1

    KD = K * K * Cin
    KD_pad = ((KD + 127) // 128) * 128          # pad contraction dim to 128 multiple

    # NCHW -> NHWC (bf16 halves the streamed bytes), ZeroPad2d, then a *free*
    # row-major reshape into the stride-2 split layout:
    #   x[n, 2i+dh, 2j+dw, c] == x_split[n*Hp2 + i, dh, j, dw*Cin + c]
    x = jnp.transpose(x_nchw.astype(jnp.bfloat16), (0, 2, 3, 1))
    x = jnp.pad(x, ((0, 0), (pad_t, pad_b), (pad_l, pad_r), (0, 0)))
    x_split = x.reshape(N * Hp2, 2, Wp2, 2 * Cin)

    # Conv weight flattened to (Cout, K*K*Cin), column order (kh, kw, cin),
    # zero-padded along the contraction dim, bf16 for the MXU.
    w_t = jnp.transpose(weight, (0, 2, 3, 1)).reshape(Cout, KD)
    w_t = jnp.pad(w_t, ((0, 0), (0, KD_pad - KD))).astype(jnp.bfloat16)
    b2 = bias.reshape(Cout, 1).astype(jnp.float32)

    kernel = _make_kernel(K, Cin, Ho, Wo, KD, KD_pad)

    # VMEM budget per step (toy shapes): ~2x input block + resident weight/bias
    # + 32KB scratch + 2x output block  << 16 MiB v5e scoped default, and far
    # below v7x's 32 MiB scoped / 64 MiB physical.  For large images, add an
    # Ho-tile grid axis and/or set vmem_limit_bytes in CompilerParams.
    out_flat = pl.pallas_call(
        kernel,
        out_shape=jax.ShapeDtypeStruct((N, Cout, Ho * Wo), jnp.float32),
        grid_spec=pltpu.PrefetchScalarGridSpec(
            num_scalar_prefetch=0,
            grid=(N,),
            in_specs=[
                # whole (padded, split-layout) sample per grid step
                pl.BlockSpec((Hp2, 2, Wp2, 2 * Cin), lambda n: (n, 0, 0, 0)),
                pl.BlockSpec((Cout, KD_pad), lambda n: (0, 0)),   # resident weight
                pl.BlockSpec((Cout, 1), lambda n: (0, 0)),        # resident bias
            ],
            out_specs=pl.BlockSpec((1, Cout, Ho * Wo), lambda n: (n, 0, 0)),
            scratch_shapes=[pltpu.VMEM((Ho, Wo, KD_pad), jnp.float32)],
        ),
        compiler_params=pltpu.CompilerParams(
            dimension_semantics=("parallel",),   # N>=2 steps -> both v7x TCs busy
        ),
    )(x_split, w_t, b2)

    # Kernel already wrote NCHW (Cout, Ho*Wo) blocks; only a free reshape left.
    return out_flat.reshape(N, Cout, Ho, Wo)


# ----------------------------------- main ------------------------------------
if __name__ == "__main__":
    # Module config: Conv2dBlock(in_channels=4, out_channels=8)
    N, Cin, H, W = 2, 4, 16, 16
    Cout, K, S, P = 8, 4, 2, 1

    key = jax.random.PRNGKey(0)
    kx, kw, kb = jax.random.split(key, 3)

    x = jax.random.normal(kx, (N, Cin, H, W), dtype=jnp.float32)
    # Deterministic parameter init (PyTorch-like uniform fan-in scale).
    fan_in = Cin * K * K
    bound = 1.0 / (fan_in ** 0.5)
    weight = jax.random.uniform(kw, (Cout, Cin, K, K), jnp.float32, -bound, bound)
    bias = jax.random.uniform(kb, (Cout,), jnp.float32, -bound, bound)

    y = conv2d_block_forward(x, weight, bias, kernel_size=K, stride=S, padding=P)
    y = jax.block_until_ready(y)

    # Reference with the SAME bf16-rounded inputs (the kernel feeds the MXU
    # bf16 operands with f32 accumulation): ZeroPad2d + Conv2d + bias + ReLU.
    x_r = x.astype(jnp.bfloat16).astype(jnp.float32)
    w_r = weight.astype(jnp.bfloat16).astype(jnp.float32)
    ref = lax.conv_general_dilated(
        x_r, w_r, window_strides=(S, S), padding=[(P, P), (P, P)],
        dimension_numbers=("NCHW", "OIHW", "NCHW"),
        preferred_element_type=jnp.float32,
    ) + bias.reshape(1, Cout, 1, 1)
    ref = jnp.maximum(ref, 0.0)

    assert y.shape == (N, Cout, 8, 8), y.shape
    assert jnp.allclose(y, ref, atol=2e-3, rtol=2e-3), float(jnp.max(jnp.abs(y - ref)))

    print("KERNEL_OK")
</pallas_src>

<mosaic_0001>
module attributes {stable_mosaic.version = 11 : i64} {
  func.func @kernel(%arg0: i32, %arg1: memref<9x2x9x8xbf16, #tpu.memory_space<vmem>>, %arg2: memref<8x128xbf16, #tpu.memory_space<vmem>>, %arg3: memref<8x1xf32, #tpu.memory_space<vmem>>, %arg4: memref<1x8x64xf32, #tpu.memory_space<vmem>>, %arg5: memref<8x8x128xf32, #tpu.memory_space<vmem>>) attributes {dimension_semantics = [#tpu.dimension_semantics<parallel>], iteration_bounds = array<i64: 2>, scalar_prefetch = 0 : i64, scratch_operands = 1 : i64, tpu.core_type = #tpu.core_type<tc>, window_params = [{transform_indices = @transform_0, window_bounds = array<i64: 9, 2, 9, 8>}, {pipeline_mode = #tpu.pipeline_mode<synchronous>, transform_indices = @transform_1, window_bounds = array<i64: 8, 128>}, {pipeline_mode = #tpu.pipeline_mode<synchronous>, transform_indices = @transform_2, window_bounds = array<i64: 8, 1>}, {transform_indices = @transform_3, window_bounds = array<i64: 1, 8, 64>}]} {
    %cst = arith.constant 0.000000e+00 : f32
    %0 = vector.broadcast %cst : f32 to vector<8x8x64xf32>
    %c0 = arith.constant 0 : index
    %c0_0 = arith.constant 0 : index
    %c64 = arith.constant 64 : index
    %1 = vector.load %arg5[%c0, %c0_0, %c64] : memref<8x8x128xf32, #tpu.memory_space<vmem>>, vector<8x8x64xf32>
    tpu.vector_store %arg5[%c0, %c0_0, %c64], %0 {strides = array<i32>} : memref<8x8x128xf32, #tpu.memory_space<vmem>>, vector<8x8x64xf32>,
    %c0_1 = arith.constant 0 : index
    %c0_2 = arith.constant 0 : index
    %c0_3 = arith.constant 0 : index
    %c0_4 = arith.constant 0 : index
    %2 = vector.load %arg1[%c0_1, %c0_2, %c0_3, %c0_4] : memref<9x2x9x8xbf16, #tpu.memory_space<vmem>>, vector<9x2x9x8xbf16>
    %3 = vector.extract_strided_slice %2 {offsets = [0, 0, 0, 0], sizes = [8, 1, 8, 8], strides = [1, 1, 1, 1]} : vector<9x2x9x8xbf16> to vector<8x1x8x8xbf16>
    %4 = vector.shape_cast %3 : vector<8x1x8x8xbf16> to vector<8x8x8xbf16>
    %5 = arith.extf %4 : vector<8x8x8xbf16> to vector<8x8x8xf32>
    %c0_5 = arith.constant 0 : index
    %c0_6 = arith.constant 0 : index
    %c0_7 = arith.constant 0 : index
    %6 = vector.load %arg5[%c0_5, %c0_6, %c0_7] : memref<8x8x128xf32, #tpu.memory_space<vmem>>, vector<8x8x8xf32>
    tpu.vector_store %arg5[%c0_5, %c0_6, %c0_7], %5 {strides = array<i32>} : memref<8x8x128xf32, #tpu.memory_space<vmem>>, vector<8x8x8xf32>,
    %7 = vector.extract_strided_slice %2 {offsets = [0, 0, 1, 0], sizes = [8, 1, 8, 8], strides = [1, 1, 1, 1]} : vector<9x2x9x8xbf16> to vector<8x1x8x8xbf16>
    %8 = vector.shape_cast %7 : vector<8x1x8x8xbf16> to vector<8x8x8xbf16>
    %9 = arith.extf %8 : vector<8x8x8xbf16> to vector<8x8x8xf32>
    %c0_8 = arith.constant 0 : index
    %c0_9 = arith.constant 0 : index
    %c8 = arith.constant 8 : index
    %10 = vector.load %arg5[%c0_8, %c0_9, %c8] : memref<8x8x128xf32, #tpu.memory_space<vmem>>, vector<8x8x8xf32>
    tpu.vector_store %arg5[%c0_8, %c0_9, %c8], %9 {strides = array<i32>} : memref<8x8x128xf32, #tpu.memory_space<vmem>>, vector<8x8x8xf32>,
    %11 = vector.extract_strided_slice %2 {offsets = [0, 1, 0, 0], sizes = [8, 1, 8, 8], strides = [1, 1, 1, 1]} : vector<9x2x9x8xbf16> to vector<8x1x8x8xbf16>
    %12 = vector.shape_cast %11 : vector<8x1x8x8xbf16> to vector<8x8x8xbf16>
    %13 = arith.extf %12 : vector<8x8x8xbf16> to vector<8x8x8xf32>
    %c0_10 = arith.constant 0 : index
    %c0_11 = arith.constant 0 : index
    %c16 = arith.constant 16 : index
    %14 = vector.load %arg5[%c0_10, %c0_11, %c16] : memref<8x8x128xf32, #tpu.memory_space<vmem>>, vector<8x8x8xf32>
    tpu.vector_store %arg5[%c0_10, %c0_11, %c16], %13 {strides = array<i32>} : memref<8x8x128xf32, #tpu.memory_space<vmem>>, vector<8x8x8xf32>,
    %15 = vector.extract_strided_slice %2 {offsets = [0, 1, 1, 0], sizes = [8, 1, 8, 8], strides = [1, 1, 1, 1]} : vector<9x2x9x8xbf16> to vector<8x1x8x8xbf16>
    %16 = vector.shape_cast %15 : vector<8x1x8x8xbf16> to vector<8x8x8xbf16>
    %17 = arith.extf %16 : vector<8x8x8xbf16> to vector<8x8x8xf32>
    %c0_12 = arith.constant 0 : index
    %c0_13 = arith.constant 0 : index
    %c24 = arith.constant 24 : index
    %18 = vector.load %arg5[%c0_12, %c0_13, %c24] : memref<8x8x128xf32, #tpu.memory_space<vmem>>, vector<8x8x8xf32>
    tpu.vector_store %arg5[%c0_12, %c0_13, %c24], %17 {strides = array<i32>} : memref<8x8x128xf32, #tpu.memory_space<vmem>>, vector<8x8x8xf32>,
    %19 = vector.extract_strided_slice %2 {offsets = [1, 0, 0, 0], sizes = [8, 1, 8, 8], strides = [1, 1, 1, 1]} : vector<9x2x9x8xbf16> to vector<8x1x8x8xbf16>
    %20 = vector.shape_cast %19 : vector<8x1x8x8xbf16> to vector<8x8x8xbf16>
    %21 = arith.extf %20 : vector<8x8x8xbf16> to vector<8x8x8xf32>
    %c0_14 = arith.constant 0 : index
    %c0_15 = arith.constant 0 : index
    %c32 = arith.constant 32 : index
    %22 = vector.load %arg5[%c0_14, %c0_15, %c32] : memref<8x8x128xf32, #tpu.memory_space<vmem>>, vector<8x8x8xf32>
    tpu.vector_store %arg5[%c0_14, %c0_15, %c32], %21 {strides = array<i32>} : memref<8x8x128xf32, #tpu.memory_space<vmem>>, vector<8x8x8xf32>,
    %23 = vector.extract_strided_slice %2 {offsets = [1, 0, 1, 0], sizes = [8, 1, 8, 8], strides = [1, 1, 1, 1]} : vector<9x2x9x8xbf16> to vector<8x1x8x8xbf16>
    %24 = vector.shape_cast %23 : vector<8x1x8x8xbf16> to vector<8x8x8xbf16>
    %25 = arith.extf %24 : vector<8x8x8xbf16> to vector<8x8x8xf32>
    %c0_16 = arith.constant 0 : index
    %c0_17 = arith.constant 0 : index
    %c40 = arith.constant 40 : index
    %26 = vector.load %arg5[%c0_16, %c0_17, %c40] : memref<8x8x128xf32, #tpu.memory_space<vmem>>, vector<8x8x8xf32>
    tpu.vector_store %arg5[%c0_16, %c0_17, %c40], %25 {strides = array<i32>} : memref<8x8x128xf32, #tpu.memory_space<vmem>>, vector<8x8x8xf32>,
    %27 = vector.extract_strided_slice %2 {offsets = [1, 1, 0, 0], sizes = [8, 1, 8, 8], strides = [1, 1, 1, 1]} : vector<9x2x9x8xbf16> to vector<8x1x8x8xbf16>
    %28 = vector.shape_cast %27 : vector<8x1x8x8xbf16> to vector<8x8x8xbf16>
    %29 = arith.extf %28 : vector<8x8x8xbf16> to vector<8x8x8xf32>
    %c0_18 = arith.constant 0 : index
    %c0_19 = arith.constant 0 : index
    %c48 = arith.constant 48 : index
    %30 = vector.load %arg5[%c0_18, %c0_19, %c48] : memref<8x8x128xf32, #tpu.memory_space<vmem>>, vector<8x8x8xf32>
    tpu.vector_store %arg5[%c0_18, %c0_19, %c48], %29 {strides = array<i32>} : memref<8x8x128xf32, #tpu.memory_space<vmem>>, vector<8x8x8xf32>,
    %31 = vector.extract_strided_slice %2 {offsets = [1, 1, 1, 0], sizes = [8, 1, 8, 8], strides = [1, 1, 1, 1]} : vector<9x2x9x8xbf16> to vector<8x1x8x8xbf16>
    %32 = vector.shape_cast %31 : vector<8x1x8x8xbf16> to vector<8x8x8xbf16>
    %33 = arith.extf %32 : vector<8x8x8xbf16> to vector<8x8x8xf32>
    %c0_20 = arith.constant 0 : index
    %c0_21 = arith.constant 0 : index
    %c56 = arith.constant 56 : index
    %34 = vector.load %arg5[%c0_20, %c0_21, %c56] : memref<8x8x128xf32, #tpu.memory_space<vmem>>, vector<8x8x8xf32>
    tpu.vector_store %arg5[%c0_20, %c0_21, %c56], %33 {strides = array<i32>} : memref<8x8x128xf32, #tpu.memory_space<vmem>>, vector<8x8x8xf32>,
    %c0_22 = arith.constant 0 : index
    %c0_23 = arith.constant 0 : index
    %c0_24 = arith.constant 0 : index
    %35 = vector.load %arg5[%c0_22, %c0_23, %c0_24] : memref<8x8x128xf32, #tpu.memory_space<vmem>>, vector<8x8x128xf32>
    %36 = vector.shape_cast %35 : vector<8x8x128xf32> to vector<64x128xf32>
    %37 = arith.truncf %36 : vector<64x128xf32> to vector<64x128xbf16>
    %c0_25 = arith.constant 0 : index
    %c0_26 = arith.constant 0 : index
    %38 = vector.load %arg2[%c0_25, %c0_26] : memref<8x128xbf16, #tpu.memory_space<vmem>>, vector<8x128xbf16>
    %cst_27 = arith.constant dense<0.000000e+00> : vector<8x64xf32>
    %39 = tpu.matmul %38, %37, %cst_27 {dimension_numbers = #tpu.dot_dimension_numbers<[1], [1], [0], [0], [0, 0, 1, 0], [], []>} : vector<8x128xbf16>, vector<64x128xbf16>, vector<8x64xf32> -> vector<8x64xf32>
    %c0_28 = arith.constant 0 : index
    %c0_29 = arith.constant 0 : index
    %40 = vector.load %arg3[%c0_28, %c0_29] : memref<8x1xf32, #tpu.memory_space<vmem>>, vector<8x1xf32>
    %41 = vector.broadcast %40 : vector<8x1xf32> to vector<8x64xf32>
    %42 = arith.addf %39, %41 : vector<8x64xf32>
    %cst_30 = arith.constant 0.000000e+00 : f32
    %43 = vector.broadcast %cst_30 : f32 to vector<8x64xf32>
    %44 = arith.maximumf %42, %43 : vector<8x64xf32>
    %c0_31 = arith.constant 0 : index
    %c0_32 = arith.constant 0 : index
    %c0_33 = arith.constant 0 : index
    %45 = vector.load %arg4[%c0_31, %c0_32, %c0_33] : memref<1x8x64xf32, #tpu.memory_space<vmem>>, vector<1x8x64xf32>
    %46 = vector.shape_cast %45 : vector<1x8x64xf32> to vector<8x64xf32>
    %47 = vector.shape_cast %44 : vector<8x64xf32> to vector<1x8x64xf32>
    tpu.vector_store %arg4[%c0_31, %c0_32, %c0_33], %47 {strides = array<i32>} : memref<1x8x64xf32, #tpu.memory_space<vmem>>, vector<1x8x64xf32>,
    return
  }
  func.func @transform_0(%arg0: i32) -> (i32, i32, i32, i32) {
    %c0_i32 = arith.constant 0 : i32
    %c0_i32_0 = arith.constant 0 : i32
    %c0_i32_1 = arith.constant 0 : i32
    %c0_i32_2 = arith.constant 0 : i32
    return %arg0, %c0_i32, %c0_i32_0, %c0_i32_1 : i32, i32, i32, i32
  }
  func.func @transform_1(%arg0: i32) -> (i32, i32) {
    %c0_i32 = arith.constant 0 : i32
    %c0_i32_0 = arith.constant 0 : i32
    %c0_i32_1 = arith.constant 0 : i32
    return %c0_i32, %c0_i32_0 : i32, i32
  }
  func.func @transform_2(%arg0: i32) -> (i32, i32) {
    %c0_i32 = arith.constant 0 : i32
    %c0_i32_0 = arith.constant 0 : i32
    %c0_i32_1 = arith.constant 0 : i32
    return %c0_i32, %c0_i32_0 : i32, i32
  }
  func.func @transform_3(%arg0: i32) -> (i32, i32, i32) {
    %c0_i32 = arith.constant 0 : i32
    %c0_i32_0 = arith.constant 0 : i32
    %c0_i32_1 = arith.constant 0 : i32
    return %arg0, %c0_i32, %c0_i32_0 : i32, i32, i32
  }
}

</mosaic_0001>

<bundles_post_ra>
// kernel: conv2d_block_forward.1
= control target key start
LH: loop header
LB: loop body
LE: loop exit
PB: predicated region body
PF: predicated region fallthrough
CT: control target
= control target key end

     0   :  { %s1084_s12 = smov 0   ;;  %s1340_s0 = inlined_call_operand.vmem [shape: bf16[18,2,9,8], index: 0, kind: input, shape index: {}]   ;;  %s1341_s1 = inlined_call_operand.vmem [shape: bf16[8,128], index: 1, kind: input, shape index: {}]   ;;  %s1342_s2 = inlined_call_operand.vmem [shape: f32[8,1], index: 2, kind: input, shape index: {}]   ;;  %s1343_s3 = inlined_call_operand.vmem [shape: f32[2,8,64], index: 3, kind: output, shape index: {}]  }
   0x1 LB: > { %s1090_s13 = sadd.s32 4294967295, %s1052_s12   ;;  %p783_p0 = scmp.ge.s32.totalorder %s1052_s12, 1  ;;  %s1052_s12 = sphi %s1084_s12, %s13_s12  }
   0x2   : > { %p139_p1 = scmp.lt.s32.totalorder %s1052_s12, 3 }
   0x4   : > { %p140_p2 = pnand %p783_p0, %p139_p1 }
   0x5   : > { %s163_s14 = smul.u32 (!%p140_p2), 9, %s1090_s13  ;;  %s1055_s19 = smov (!%p140_p2), 16  }
   0x6   : > { %143 = sbr.rel (%p140_p2) target bundleno = 438 (0x1b6), region = 32  ;;  %s1056_s20 = smov (!%p140_p2), 8  }
   0x7   : > { %p164_p3 = scmp.lt.s32.totalorder (!%p140_p2), %s163_s14, 17  ;;  %s1057_s21 = smov (!%p140_p2), 24  }
   0x8   : > { %s1058_s22 = smov (!%p140_p2), 32   ;;  %s1059_s23 = smov (!%p140_p2), 40  }
   0x9   : > { %s1060_s24 = smov (!%p140_p2), 56   ;;  %s1061_s25 = smov (!%p140_p2), 48  }
   0xa   : > { %p170_p4 = scmp.lt.s32.totalorder (!%p140_p2), %s1090_s13, 1 }
   0xb   : > { %vm175_vm0 = vcmask 1048064   ;;  %v1054_v0 = vmov 0.0   ;;  %s1345_s14 = smov (!%p164_p3, %s163_s14), 17  ;;  %vm228_vm1 = vcmask 64512   ;;  %vm1062_vm2 = vmmov 0  }
   0xc   : > { %182 = vst.msk [vmem:[#allocation2 + $0x30] sm:$0xff] %vm175_vm0, %v1054_v0  ;;  %176 = vst.msk [vmem:[#allocation2] sm:$0xff] %vm175_vm0, %v1054_v0  ;;  %795 = vmatprep.subr.bf16.mxu0 %v1054_v0  ;;  %s789_s15 = sshll.u32 %s1345_s14, 4  ;;  %803 = vmatprep.mubr.msk.bf16.mxu0 %vm1062_vm2, %v1054_v0  ;;  %vm309_vm3 = vcmask 130113   ;;  %vm311_vm4 = vcmask 122944   ;;  %vm367_vm5 = vcmask 195712  }
   0xd   : > { %177 = vst.msk [vmem:[#allocation2 + $0x8] sm:$0xff] %vm175_vm0, %v1054_v0  ;;  %178 = vst.msk [vmem:[#allocation2 + $0x10] sm:$0xff] %vm175_vm0, %v1054_v0  ;;  %s1107_s18 = scalar_lea.vmem %s1340_s0, %s789_s15  ;;  %vm440_vm6 = vcmask 261313   ;;  %vm442_vm7 = vcmask 254144   ;;  %vm484_vm8 = vcmask 326912   ;;  %vm543_vm9 = vcmask 392513  }
   0xe   : > { %179 = vst.msk [vmem:[#allocation2 + $0x18] sm:$0xff] %vm175_vm0, %v1054_v0  ;;  %180 = vst.msk [vmem:[#allocation2 + $0x20] sm:$0xff] %vm175_vm0, %v1054_v0  ;;  %v210_v1 = vld [vmem:[%s1107_s18 + $0x68] ss:$16 sps:$4 sm:$0xff]   ;;  %v208_v2 = vld [vmem:[%s1107_s18 + $0x60] ss:$16 sps:$4 sm:$0xff]  }
   0xf   : > { %181 = vst.msk [vmem:[#allocation2 + $0x28] sm:$0xff] %vm175_vm0, %v1054_v0  ;;  %183 = vst.msk [vmem:[#allocation2 + $0x38] sm:$0xff] %vm175_vm0, %v1054_v0  ;;  %v209_v3 = vld [vmem:[%s1107_s18 + $0x64] sm:$0x1]  ;;  %v1112_v4 = vunpack.c.l.bf16 %v210_v1  ;;  %v334_v5 = vunpack.c.h.bf16 %v210_v1  ;;  %v1114_v6 = vunpack.c.l.bf16 %v208_v2  ;;  %v211_v8 = vld [vmem:[%s1107_s18 + $0x6c] sm:$0x1]  ;;  %v227_v11 = vunpack.c.h.bf16 %v208_v2 }
  0x10   : > { %v243_v7 = vunpack.c.l.bf16 %v209_v3  ;;  %v213_v9 = vld [vmem:[%s1107_s18 + $0x74] sm:$0x1]  ;;  %v382_v10 = vunpack.c.l.bf16 %v211_v8  ;;  %v216_v13 = vld [vmem:[%s1107_s18 + $0x80] ss:$8 sps:$4 sm:$0xff]   ;;  %v215_v14 = vld [vmem:[%s1107_s18 + $0x7c] sm:$0x1] }
  0x11   : > { %v244_v12 = vunpack.c.l.bf16 %v213_v9  ;;  %v835_v15 = vpack.i.bf16 %v334_v5, %v1112_v4  ;;  %v200_v17 = vld [vmem:[%s1107_s18 + $0x40] ss:$16 sps:$4 sm:$0xff]   ;;  %235 = vst.msk [vmem:[#allocation2 + $0x30] sm:$0xff] %vm228_vm1, %v1114_v6  ;;  %236 = vst.msk [vmem:[#allocation2 + $0x38] sm:$0xff] %vm228_vm1, %v227_v11  ;;  %v458_v20 = vunpack.c.l.bf16 %v216_v13  ;;  %v383_v21 = vunpack.c.l.bf16 %v215_v14  ;;  %v217_v22 = vld [vmem:[%s1107_s18 + $0x84] sm:$0x1] }
  0x12   : > { %v1122_v16 = vpack.i.bf16 %v243_v7, %v1114_v6  ;;  %v1132_v18 = vpack.i.bf16 %v382_v10, %v1112_v4  ;;  %v1135_v23 = vunpack.c.l.bf16 %v200_v17  ;;  %v225_v24 = vunpack.c.h.bf16 %v200_v17  ;;  %v196_v25 = vld [vmem:[%s1107_s18 + $0x20] ss:$16 sps:$4 sm:$0xff]   ;;  %v219_v34 = vld [vmem:[%s1107_s18 + $0x8c] sm:$0x1]  ;;  %v201_v35 = vld [vmem:[%s1107_s18 + $0x44] sm:$0x1] }
  0x13   : > { %836 = vrot.lane.b32.xlu1 %v835_v15, %s1055_s19  ;;  %v830_v19 = vpack.i.bf16 %v244_v12, %v227_v11  ;;  %v850_v26 = vpack.i.bf16 %v458_v20, %v227_v11  ;;  %v845_v27 = vpack.i.bf16 %v383_v21, %v334_v5  ;;  %v493_v28 = vunpack.c.l.bf16 %v217_v22  ;;  %v1153_v33 = vld [vmem:[%s1107_s18] ss:$16 sps:$4 sm:$0xff]   ;;  %v205_v41 = vld [vmem:[%s1107_s18 + $0x54] sm:$0x1]  ;;  %v202_v42 = vld [vmem:[%s1107_s18 + $0x48] ss:$16 sps:$4 sm:$0xff]  }
  0x14   : > { %826 = vrot.lane.b32.xlu0 %v1122_v16, %s1056_s20  ;;  %233 = vst.msk [vmem:[#allocation2 + $0x20] sm:$0xff] %vm228_vm1, %v1135_v23  ;;  %234 = vst.msk [vmem:[#allocation2 + $0x28] sm:$0xff] %vm228_vm1, %v225_v24  ;;  %v1144_v29 = vunpack.c.h.bf16 %v196_v25  ;;  %v1148_v30 = vunpack.c.l.bf16 %v196_v25  ;;  %v561_v32 = vunpack.c.h.bf16 %v216_v13  ;;  %v220_v36 = vunpack.c.l.bf16 %v1153_v33  ;;  %v203_v48 = vld [vmem:[%s1107_s18 + $0x4c] sm:$0x1]  ;;  %v207_v49 = vld [vmem:[%s1107_s18 + $0x5c] sm:$0x1] }
  0x15   : > { %v860_v31 = vpack.i.bf16 %v493_v28, %v458_v20  ;;  %v1161_v37 = vunpack.c.h.bf16 %v1153_v33  ;;  %v596_v39 = vunpack.c.l.bf16 %v219_v34  ;;  %v241_v40 = vunpack.c.l.bf16 %v201_v35  ;;  %v197_v58 = vld [vmem:[%s1107_s18 + $0x34] sm:$0x1]  ;;  %v193_v59 = vld [vmem:[%s1107_s18 + $0x24] sm:$0x1]  ;;  %v194_v62 = vld [vmem:[%s1107_s18 + $0x28] ss:$16 sps:$4 sm:$0xff]  }
  0x16   : > { %232 = vst.msk [vmem:[#allocation2 + $0x18] sm:$0xff] %vm228_vm1, %v1144_v29  ;;  %231 = vst.msk [vmem:[#allocation2 + $0x10] sm:$0xff] %vm228_vm1, %v1148_v30  ;;  %v865_v38 = vpack.i.bf16 %v561_v32, %v334_v5  ;;  %v242_v43 = vunpack.c.l.bf16 %v205_v41  ;;  %v331_v46 = vunpack.c.l.bf16 %v202_v42  ;;  %v332_v47 = vunpack.c.h.bf16 %v202_v42  ;;  %v195_v63 = vld [vmem:[%s1107_s18 + $0x2c] sm:$0x1]  ;;  %v185_v12 = vld [vmem:[%s1107_s18 + $0x4] sm:$0x1] }
  0x17   : > { %841 = vrot.lane.b32.xlu1 %v1132_v18, %s1057_s21  ;;  %229 = vst.msk [vmem:[#allocation2] sm:$0xff] %vm228_vm1, %v220_v36  ;;  %230 = vst.msk [vmem:[#allocation2 + $0x8] sm:$0xff] %vm228_vm1, %v1161_v37  ;;  %v875_v44 = vpack.i.bf16 %v596_v39, %v561_v32  ;;  %v880_v45 = vpack.i.bf16 %v241_v40, %v1135_v23  ;;  %v380_v52 = vunpack.c.l.bf16 %v203_v48  ;;  %v381_v53 = vunpack.c.l.bf16 %v207_v49  ;;  %v189_v15 = vld [vmem:[%s1107_s18 + $0x14] sm:$0x1]  ;;  %v187_v21 = vld [vmem:[%s1107_s18 + $0xc] sm:$0x1] }
  0x18   : > { %831 = vrot.lane.b32.xlu0 %v830_v19, %s1056_s20  ;;  %v885_v50 = vpack.i.bf16 %v242_v43, %v225_v24  ;;  %v890_v51 = vpack.i.bf16 %v332_v47, %v331_v46  ;;  %v905_v56 = vpack.i.bf16 %v1114_v6, %v225_v24  ;;  %v920_v57 = vpack.i.bf16 %v1112_v4, %v332_v47  ;;  %v199_v6 = vld [vmem:[%s1107_s18 + $0x3c] sm:$0x1]  ;;  %s1347_s13 = smov (!%p170_p4, %s1090_s13), 1 }
  0x19   : > { %v895_v54 = vpack.i.bf16 %v380_v52, %v331_v46  ;;  %v900_v55 = vpack.i.bf16 %v381_v53, %v332_v47  ;;  %v240_v60 = vunpack.c.l.bf16 %v197_v58  ;;  %v239_v61 = vunpack.c.l.bf16 %v193_v59  ;;  %v191_v22 = vld [vmem:[%s1107_s18 + $0x1c] sm:$0x1]  ;;  %s786_s30 = sshll.u32 %s1347_s13, 3 }
  0x1a   : > { %v329_v1 = vunpack.c.l.bf16 %v194_v62  ;;  %v378_v4 = vunpack.c.l.bf16 %v195_v63  ;;  %v330_v5 = vunpack.c.h.bf16 %v194_v62  ;;  %v379_v9 = vunpack.c.l.bf16 %v199_v6  ;;  %s173_s6 = scalar_lea.vmem %s1343_s3, %s786_s30 }
  0x1b   : > { %851 = vrot.lane.b32.xlu1 %v850_v26, %s1058_s22  ;;  %v940_v2 = vpack.i.bf16 %v240_v60, %v1144_v29  ;;  %v935_v3 = vpack.i.bf16 %v239_v61, %v1148_v30  ;;  %v960_v10 = vpack.i.bf16 %v1135_v23, %v1144_v29  ;;  %v237_v14 = vunpack.c.l.bf16 %v185_v12 }
  0x1c   : > { %846 = vrot.lane.b32.xlu0 %v845_v27, %s1057_s21  ;;  %v950_v7 = vpack.i.bf16 %v378_v4, %v329_v1  ;;  %v945_v8 = vpack.i.bf16 %v330_v5, %v329_v1  ;;  %v955_v11 = vpack.i.bf16 %v379_v9, %v330_v5  ;;  %v975_v13 = vpack.i.bf16 %v331_v46, %v330_v5 }
  0x1d   : > { %v990_v17 = vpack.i.bf16 %v237_v14, %v220_v36  ;;  %v376_v25 = vunpack.c.l.bf16 %v187_v21  ;;  %v377_v26 = vunpack.c.l.bf16 %v191_v22  ;;  %v1015_v29 = vpack.i.bf16 %v1148_v30, %v1161_v37  ;;  %v677_v30 = vld [vmem:[%s1342_s2] sm:$0xff] }
  0x1e   : > { %v1063_v32 = vmov 0   ;;  %vm545_vm10 = vcmask 385344   ;;  %vm587_vm11 = vcmask 458112   ;;  %vm646_vm12 = vcmask 523713  }
  0x1f   : > { %861 = vrot.lane.b32.xlu1 %v860_v31, %s1059_s23  ;;  %1045 = vset.pattern.permute.xlu0 %v1063_v32  ;;  %vm648_vm13 = vcmask 516544   ;;  %vm724_vm14 = vcmask 523264  }
  0x20   : > { %856 = vrot.lane.b32.xlu0 %v830_v19, %s1059_s23 }
  0x23   : > { %871 = vrot.lane.b32.xlu1 %v845_v27, %s1060_s24 }
  0x24   : > { %866 = vrot.lane.b32.xlu0 %v865_v38, %s1061_s25 }
  0x27   : > { %881 = vrot.lane.b32.xlu1 %v880_v45, %s1056_s20 }
  0x28   : > { %876 = vrot.lane.b32.xlu0 %v875_v44, %s1060_s24 }
  0x2b   : > { %891 = vrot.lane.b32.xlu1 %v890_v51, %s1055_s19 }
  0x2c   : > { %886 = vrot.lane.b32.xlu0 %v885_v50, %s1056_s20 }
  0x2f   : > { %901 = vrot.lane.b32.xlu1 %v900_v55, %s1057_s21 }
  0x30   : > { %896 = vrot.lane.b32.xlu0 %v895_v54, %s1057_s21 }
  0x33   : > { %911 = vrot.lane.b32.xlu1 %v885_v50, %s1059_s23 }
  0x34   : > { %906 = vrot.lane.b32.xlu0 %v905_v56, %s1058_s22 }
  0x37   : > { %921 = vrot.lane.b32.xlu1 %v920_v57, %s1061_s25 }
  0x38   : > { %916 = vrot.lane.b32.xlu0 %v1122_v16, %s1059_s23  ;;  %v186_v16 = vld [vmem:[%s1107_s18 + $0x8] ss:$16 sps:$4 sm:$0xff]  }
  0x39   : > { %v327_v19 = vunpack.c.l.bf16 %v186_v16  ;;  %v328_v20 = vunpack.c.h.bf16 %v186_v16 }
  0x3b   : > { %931 = vrot.lane.b32.xlu1 %v1132_v18, %s1060_s24  ;;  %v238_v18 = vunpack.c.l.bf16 %v189_v15  ;;  %v1000_v24 = vpack.i.bf16 %v328_v20, %v327_v19  ;;  %v1005_v27 = vpack.i.bf16 %v376_v25, %v327_v19  ;;  %v1010_v28 = vpack.i.bf16 %v377_v26, %v328_v20 }
  0x3c   : > { %926 = vrot.lane.b32.xlu0 %v900_v55, %s1060_s24  ;;  %v1030_v31 = vpack.i.bf16 %v329_v1, %v328_v20 }
  0x3d   : > { %v995_v23 = vpack.i.bf16 %v238_v18, %v1161_v37 }
  0x3f   : > { %941 = vrot.lane.b32.xlu1 %v940_v2, %s1056_s20 }
  0x40   : > { %936 = vrot.lane.b32.xlu0 %v935_v3, %s1056_s20 }
  0x43   : > { %951 = vrot.lane.b32.xlu1 %v950_v7, %s1057_s21 }
  0x44   : > { %946 = vrot.lane.b32.xlu0 %v945_v8, %s1055_s19 }
  0x47   : > { %961 = vrot.lane.b32.xlu1 %v960_v10, %s1058_s22 }
  0x48   : > { %956 = vrot.lane.b32.xlu0 %v955_v11, %s1057_s21 }
  0x4b   : > { %971 = vrot.lane.b32.xlu1 %v880_v45, %s1059_s23 }
  0x4c   : > { %966 = vrot.lane.b32.xlu0 %v940_v2, %s1059_s23 }
  0x4f   : > { %981 = vrot.lane.b32.xlu1 %v955_v11, %s1060_s24 }
  0x50   : > { %976 = vrot.lane.b32.xlu0 %v975_v13, %s1061_s25 }
  0x53   : > { %991 = vrot.lane.b32.xlu1 %v990_v17, %s1056_s20 }
  0x54   : > { %986 = vrot.lane.b32.xlu0 %v895_v54, %s1060_s24 }
  0x57   : > { %1001 = vrot.lane.b32.xlu1 %v1000_v24, %s1055_s19 }
  0x58   : > { %996 = vrot.lane.b32.xlu0 %v995_v23, %s1056_s20 }
  0x5b   : > { %1011 = vrot.lane.b32.xlu1 %v1010_v28, %s1057_s21 }
  0x5c   : > { %1006 = vrot.lane.b32.xlu0 %v1005_v27, %s1057_s21 }
  0x5f   : > { %1021 = vrot.lane.b32.xlu1 %v995_v23, %s1059_s23 }
  0x60   : > { %1016 = vrot.lane.b32.xlu0 %v1015_v29, %s1058_s22 }
  0x63   : > { %1031 = vrot.lane.b32.xlu1 %v1030_v31, %s1061_s25 }
  0x64   : > { %1026 = vrot.lane.b32.xlu0 %v935_v3, %s1059_s23 }
  0x67   : > { %1041 = vrot.lane.b32.xlu1 %v950_v7, %s1060_s24 }
  0x68   : > { %1036 = vrot.lane.b32.xlu0 %v1010_v28, %s1060_s24 }
  0x6c   : > { %680 = vperm.xlu0 %1045, %v677_v30  }
  0x85   : > { %v837_v33 = vpop.permute.xlu1 %836 }
  0x86   : > { %v827_v34 = vpop.permute.xlu0 %826  ;;  %v838_v35 = vunpack.i.l.bf16 %v837_v33  ;;  %v839_v44 = vunpack.i.h.bf16 %v837_v33 }
  0x87   : > { %v829_v36 = vunpack.i.h.bf16 %v827_v34  ;;  %v828_v37 = vunpack.i.l.bf16 %v827_v34 }
  0x89   : > { %323 = vst.msk [vmem:[#allocation2 + $0x2f] sm:$0xfe] %vm309_vm3, %v828_v37  ;;  %v842_v38 = vpop.permute.xlu1 %841 }
  0x8a   : > { %324 = vst.msk [vmem:[#allocation2 + $0x37] sm:$0x1] %vm311_vm4, %v829_v36  ;;  %v832_v39 = vpop.permute.xlu0 %831  ;;  %v844_v40 = vunpack.i.h.bf16 %v842_v38  ;;  %v843_v41 = vunpack.i.l.bf16 %v842_v38 }
  0x8b   : > { %374 = vst.msk [vmem:[#allocation2 + $0x30] sm:$0xff] %vm367_vm5, %v838_v35  ;;  %v834_v42 = vunpack.i.h.bf16 %v832_v39  ;;  %v833_v43 = vunpack.i.l.bf16 %v832_v39 }
  0x8c   : > { %454 = vst.msk [vmem:[#allocation2 + $0x2f] sm:$0xfe] %vm440_vm6, %v843_v41 }
  0x8d   : > { %455 = vst.msk [vmem:[#allocation2 + $0x37] sm:$0x1] %vm442_vm7, %v844_v40  ;;  %v852_v45 = vpop.permute.xlu1 %851 }
  0x8e   : > { %326 = vst.msk [vmem:[#allocation2 + $0x3f] sm:$0x1] %vm311_vm4, %v834_v42  ;;  %v847_v46 = vpop.permute.xlu0 %846  ;;  %v854_v47 = vunpack.i.h.bf16 %v852_v45  ;;  %v853_v48 = vunpack.i.l.bf16 %v852_v45 }
  0x8f   : > { %325 = vst.msk [vmem:[#allocation2 + $0x37] sm:$0xfe] %vm309_vm3, %v833_v43  ;;  %v849_v49 = vunpack.i.h.bf16 %v847_v46  ;;  %v848_v50 = vunpack.i.l.bf16 %v847_v46 }
  0x90   : > { %375 = vst.msk [vmem:[#allocation2 + $0x38] sm:$0xff] %vm367_vm5, %v839_v44 }
  0x91   : > { %456 = vst.msk [vmem:[#allocation2 + $0x37] sm:$0xfe] %vm440_vm6, %v848_v50  ;;  %v862_v51 = vpop.permute.xlu1 %861 }
  0x92   : > { %457 = vst.msk [vmem:[#allocation2 + $0x3f] sm:$0x1] %vm442_vm7, %v849_v49  ;;  %v857_v52 = vpop.permute.xlu0 %856  ;;  %v864_v53 = vunpack.i.h.bf16 %v862_v51  ;;  %v863_v54 = vunpack.i.l.bf16 %v862_v51 }
  0x93   : > { %491 = vst.msk [vmem:[#allocation2 + $0x30] sm:$0xff] %vm484_vm8, %v853_v48  ;;  %492 = vst.msk [vmem:[#allocation2 + $0x38] sm:$0xff] %vm484_vm8, %v854_v47  ;;  %v859_v55 = vunpack.i.h.bf16 %v857_v52  ;;  %v858_v56 = vunpack.i.l.bf16 %v857_v52 }
  0x94   : > { %559 = vst.msk [vmem:[#allocation2 + $0x37] sm:$0xfe] %vm543_vm9, %v863_v54 }
  0x95   : > { %560 = vst.msk [vmem:[#allocation2 + $0x3f] sm:$0x1] %vm545_vm10, %v864_v53  ;;  %558 = vst.msk [vmem:[#allocation2 + $0x37] sm:$0x1] %vm545_vm10, %v859_v55  ;;  %v872_v57 = vpop.permute.xlu1 %871 }
  0x96   : > { %557 = vst.msk [vmem:[#allocation2 + $0x2f] sm:$0xfe] %vm543_vm9, %v858_v56  ;;  %v867_v58 = vpop.permute.xlu0 %866  ;;  %v874_v59 = vunpack.i.h.bf16 %v872_v57  ;;  %v873_v60 = vunpack.i.l.bf16 %v872_v57 }
  0x97   : > { %v869_v61 = vunpack.i.h.bf16 %v867_v58  ;;  %v868_v62 = vunpack.i.l.bf16 %v867_v58 }
  0x99   : > { %594 = vst.msk [vmem:[#allocation2 + $0x30] sm:$0xff] %vm587_vm11, %v868_v62  ;;  %595 = vst.msk [vmem:[#allocation2 + $0x38] sm:$0xff] %vm587_vm11, %v869_v61  ;;  %v882_v1 = vpop.permute.xlu1 %881 }
  0x9a   : > { %660 = vst.msk [vmem:[#allocation2 + $0x2f] sm:$0xfe] %vm646_vm12, %v873_v60  ;;  %v877_v63 = vpop.permute.xlu0 %876  ;;  %v884_v4 = vunpack.i.h.bf16 %v882_v1  ;;  %v883_v5 = vunpack.i.l.bf16 %v882_v1 }
  0x9b   : > { %661 = vst.msk [vmem:[#allocation2 + $0x37] sm:$0x1] %vm648_vm13, %v874_v59  ;;  %v879_v2 = vunpack.i.h.bf16 %v877_v63  ;;  %v878_v3 = vunpack.i.l.bf16 %v877_v63 }
  0x9c   : > { %319 = vst.msk [vmem:[#allocation2 + $0x1f] sm:$0xfe] %vm309_vm3, %v883_v5 }
  0x9d   : > { %662 = vst.msk [vmem:[#allocation2 + $0x37] sm:$0xfe] %vm646_vm12, %v878_v3  ;;  %v892_v7 = vpop.permute.xlu1 %891 }
  0x9e   : > { %663 = vst.msk [vmem:[#allocation2 + $0x3f] sm:$0x1] %vm648_vm13, %v879_v2  ;;  %v887_v6 = vpop.permute.xlu0 %886  ;;  %v894_v10 = vunpack.i.h.bf16 %v892_v7  ;;  %v893_v11 = vunpack.i.l.bf16 %v892_v7 }
  0x9f   : > { %320 = vst.msk [vmem:[#allocation2 + $0x27] sm:$0x1] %vm311_vm4, %v884_v4  ;;  %v889_v8 = vunpack.i.h.bf16 %v887_v6  ;;  %v888_v9 = vunpack.i.l.bf16 %v887_v6 }
  0xa0   : > { %372 = vst.msk [vmem:[#allocation2 + $0x20] sm:$0xff] %vm367_vm5, %v893_v11 }
  0xa1   : > { %321 = vst.msk [vmem:[#allocation2 + $0x27] sm:$0xfe] %vm309_vm3, %v888_v9  ;;  %v902_v13 = vpop.permute.xlu1 %901 }
  0xa2   : > { %322 = vst.msk [vmem:[#allocation2 + $0x2f] sm:$0x1] %vm311_vm4, %v889_v8  ;;  %v897_v12 = vpop.permute.xlu0 %896  ;;  %v904_v16 = vunpack.i.h.bf16 %v902_v13  ;;  %v903_v17 = vunpack.i.l.bf16 %v902_v13  ;;  %v670_v18 = vld [vmem:[#allocation2 + $0x30] sm:$0xff] }
  0xa3   : > { %373 = vst.msk [vmem:[#allocation2 + $0x28] sm:$0xff] %vm367_vm5, %v894_v10  ;;  %v899_v14 = vunpack.i.h.bf16 %v897_v12  ;;  %v898_v15 = vunpack.i.l.bf16 %v897_v12 }
  0xa4   : > { %452 = vst.msk [vmem:[#allocation2 + $0x27] sm:$0xfe] %vm440_vm6, %v903_v17 }
  0xa5   : > { %v671_v19 = vld [vmem:[#allocation2 + $0x38] sm:$0xff]  ;;  %450 = vst.msk [vmem:[#allocation2 + $0x1f] sm:$0xfe] %vm440_vm6, %v898_v15  ;;  %v912_v22 = vpop.permute.xlu1 %911 }
  0xa6   : > { %451 = vst.msk [vmem:[#allocation2 + $0x27] sm:$0x1] %vm442_vm7, %v899_v14  ;;  %453 = vst.msk [vmem:[#allocation2 + $0x2f] sm:$0x1] %vm442_vm7, %v904_v16  ;;  %v675_v20 = vpack.c.bf16 %v671_v19, %v670_v18  ;;  %v907_v21 = vpop.permute.xlu0 %906  ;;  %v914_v25 = vunpack.i.h.bf16 %v912_v22  ;;  %v913_v26 = vunpack.i.l.bf16 %v912_v22 }
  0xa7   : > { %v909_v23 = vunpack.i.h.bf16 %v907_v21  ;;  %v908_v24 = vunpack.i.l.bf16 %v907_v21 }
  0xa8   : > { %796 = vmatpush3.bf16.xpose.msra.mxu0 %v675_v20 }
  0xa9   : > { %797 = vmatprep.subr.bf16.mxu0 %v1054_v0  ;;  %489 = vst.msk [vmem:[#allocation2 + $0x20] sm:$0xff] %vm484_vm8, %v908_v24  ;;  %490 = vst.msk [vmem:[#allocation2 + $0x28] sm:$0xff] %vm484_vm8, %v909_v23  ;;  %v922_v28 = vpop.permute.xlu1 %921 }
  0xaa   : > { %553 = vst.msk [vmem:[#allocation2 + $0x1f] sm:$0xfe] %vm543_vm9, %v913_v26  ;;  %v917_v27 = vpop.permute.xlu0 %916  ;;  %v924_v30 = vunpack.i.h.bf16 %v922_v28  ;;  %v923_v32 = vunpack.i.l.bf16 %v922_v28 }
  0xab   : > { %554 = vst.msk [vmem:[#allocation2 + $0x27] sm:$0x1] %vm545_vm10, %v914_v25  ;;  %v919_v29 = vunpack.i.h.bf16 %v917_v27  ;;  %v918_v31 = vunpack.i.l.bf16 %v917_v27 }
  0xac   : > { %592 = vst.msk [vmem:[#allocation2 + $0x20] sm:$0xff] %vm587_vm11, %v923_v32 }
  0xad   : > { %555 = vst.msk [vmem:[#allocation2 + $0x27] sm:$0xfe] %vm543_vm9, %v918_v31  ;;  %v932_v34 = vpop.permute.xlu1 %931 }
  0xae   : > { %556 = vst.msk [vmem:[#allocation2 + $0x2f] sm:$0x1] %vm545_vm10, %v919_v29  ;;  %v927_v33 = vpop.permute.xlu0 %926  ;;  %v934_v37 = vunpack.i.h.bf16 %v932_v34  ;;  %v933_v38 = vunpack.i.l.bf16 %v932_v34 }
  0xaf   : > { %593 = vst.msk [vmem:[#allocation2 + $0x28] sm:$0xff] %vm587_vm11, %v924_v30  ;;  %v929_v35 = vunpack.i.h.bf16 %v927_v33  ;;  %v928_v36 = vunpack.i.l.bf16 %v927_v33 }
  0xb0   : > { %658 = vst.msk [vmem:[#allocation2 + $0x27] sm:$0xfe] %vm646_vm12, %v933_v38 }
  0xb1   : > { %656 = vst.msk [vmem:[#allocation2 + $0x1f] sm:$0xfe] %vm646_vm12, %v928_v36  ;;  %v942_v39 = vpop.permute.xlu1 %941 }
  0xb2   : > { %657 = vst.msk [vmem:[#allocation2 + $0x27] sm:$0x1] %vm648_vm13, %v929_v35  ;;  %659 = vst.msk [vmem:[#allocation2 + $0x2f] sm:$0x1] %vm648_vm13, %v934_v37  ;;  %v937_v40 = vpop.permute.xlu0 %936  ;;  %v944_v41 = vunpack.i.h.bf16 %v942_v39  ;;  %v943_v42 = vunpack.i.l.bf16 %v942_v39 }
  0xb3   : > { %v939_v43 = vunpack.i.h.bf16 %v937_v40  ;;  %v938_v44 = vunpack.i.l.bf16 %v937_v40 }
  0xb4   : > { %317 = vst.msk [vmem:[#allocation2 + $0x17] sm:$0xfe] %vm309_vm3, %v943_v42 }
  0xb5   : > { %318 = vst.msk [vmem:[#allocation2 + $0x1f] sm:$0x1] %vm311_vm4, %v944_v41  ;;  %316 = vst.msk [vmem:[#allocation2 + $0x17] sm:$0x1] %vm311_vm4, %v939_v43  ;;  %v952_v45 = vpop.permute.xlu1 %951 }
  0xb6   : > { %315 = vst.msk [vmem:[#allocation2 + $0xf] sm:$0xfe] %vm309_vm3, %v938_v44  ;;  %v947_v46 = vpop.permute.xlu0 %946  ;;  %v954_v47 = vunpack.i.h.bf16 %v952_v45  ;;  %v953_v48 = vunpack.i.l.bf16 %v952_v45 }
  0xb7   : > { %v949_v49 = vunpack.i.h.bf16 %v947_v46  ;;  %v948_v50 = vunpack.i.l.bf16 %v947_v46 }
  0xb9   : > { %v668_v51 = vld [vmem:[#allocation2 + $0x20] sm:$0xff]  ;;  %v669_v52 = vld [vmem:[#allocation2 + $0x28] sm:$0xff]  ;;  %370 = vst.msk [vmem:[#allocation2 + $0x10] sm:$0xff] %vm367_vm5, %v948_v50  ;;  %371 = vst.msk [vmem:[#allocation2 + $0x18] sm:$0xff] %vm367_vm5, %v949_v49  ;;  %v962_v54 = vpop.permute.xlu1 %961 }
  0xba   : > { %v674_v53 = vpack.c.bf16 %v669_v52, %v668_v51  ;;  %446 = vst.msk [vmem:[#allocation2 + $0xf] sm:$0xfe] %vm440_vm6, %v953_v48  ;;  %v957_v55 = vpop.permute.xlu0 %956  ;;  %v964_v56 = vunpack.i.h.bf16 %v962_v54  ;;  %v963_v57 = vunpack.i.l.bf16 %v962_v54  ;;  %v676_v50 = vld [vmem:[%s1341_s1] sm:$0xf] }
  0xbb   : > { %447 = vst.msk [vmem:[#allocation2 + $0x17] sm:$0x1] %vm442_vm7, %v954_v47  ;;  %v959_v58 = vunpack.i.h.bf16 %v957_v55  ;;  %v958_v59 = vunpack.i.l.bf16 %v957_v55 }
  0xbc   : > { %798 = vmatpush3.bf16.xpose.msra.mxu0 %v674_v53  ;;  %487 = vst.msk [vmem:[#allocation2 + $0x10] sm:$0xff] %vm484_vm8, %v963_v57 }
  0xbd   : > { %799 = vmatprep.subr.bf16.mxu0 %v1054_v0  ;;  %448 = vst.msk [vmem:[#allocation2 + $0x17] sm:$0xfe] %vm440_vm6, %v958_v59  ;;  %v972_v60 = vpop.permute.xlu1 %971 }
  0xbe   : > { %449 = vst.msk [vmem:[#allocation2 + $0x1f] sm:$0x1] %vm442_vm7, %v959_v58  ;;  %v967_v61 = vpop.permute.xlu0 %966  ;;  %v974_v62 = vunpack.i.h.bf16 %v972_v60  ;;  %v973_v63 = vunpack.i.l.bf16 %v972_v60 }
  0xbf   : > { %488 = vst.msk [vmem:[#allocation2 + $0x18] sm:$0xff] %vm484_vm8, %v964_v56  ;;  %v969_v1 = vunpack.i.h.bf16 %v967_v61  ;;  %v968_v2 = vunpack.i.l.bf16 %v967_v61 }
  0xc0   : > { %551 = vst.msk [vmem:[#allocation2 + $0x17] sm:$0xfe] %vm543_vm9, %v973_v63 }
  0xc1   : > { %552 = vst.msk [vmem:[#allocation2 + $0x1f] sm:$0x1] %vm545_vm10, %v974_v62  ;;  %550 = vst.msk [vmem:[#allocation2 + $0x17] sm:$0x1] %vm545_vm10, %v969_v1  ;;  %v982_v3 = vpop.permute.xlu1 %981 }
  0xc2   : > { %549 = vst.msk [vmem:[#allocation2 + $0xf] sm:$0xfe] %vm543_vm9, %v968_v2  ;;  %v977_v4 = vpop.permute.xlu0 %976  ;;  %v984_v5 = vunpack.i.h.bf16 %v982_v3  ;;  %v983_v6 = vunpack.i.l.bf16 %v982_v3 }
  0xc3   : > { %v979_v7 = vunpack.i.h.bf16 %v977_v4  ;;  %v978_v8 = vunpack.i.l.bf16 %v977_v4 }
  0xc5   : > { %590 = vst.msk [vmem:[#allocation2 + $0x10] sm:$0xff] %vm587_vm11, %v978_v8  ;;  %591 = vst.msk [vmem:[#allocation2 + $0x18] sm:$0xff] %vm587_vm11, %v979_v7  ;;  %v992_v10 = vpop.permute.xlu1 %991 }
  0xc6   : > { %652 = vst.msk [vmem:[#allocation2 + $0xf] sm:$0xfe] %vm646_vm12, %v983_v6  ;;  %v987_v9 = vpop.permute.xlu0 %986  ;;  %v994_v13 = vunpack.i.h.bf16 %v992_v10  ;;  %v993_v14 = vunpack.i.l.bf16 %v992_v10 }
  0xc7   : > { %653 = vst.msk [vmem:[#allocation2 + $0x17] sm:$0x1] %vm648_vm13, %v984_v5  ;;  %v989_v11 = vunpack.i.h.bf16 %v987_v9  ;;  %v988_v12 = vunpack.i.l.bf16 %v987_v9 }
  0xc8   : > { %310 = vst.msk [vmem:[#allocation2 - $0x1] sm:$0xfe] %vm309_vm3, %v993_v14 }
  0xc9   : > { %654 = vst.msk [vmem:[#allocation2 + $0x17] sm:$0xfe] %vm646_vm12, %v988_v12  ;;  %v1002_v16 = vpop.permute.xlu1 %1001 }
  0xca   : > { %655 = vst.msk [vmem:[#allocation2 + $0x1f] sm:$0x1] %vm648_vm13, %v989_v11  ;;  %v997_v15 = vpop.permute.xlu0 %996  ;;  %v1004_v19 = vunpack.i.h.bf16 %v1002_v16  ;;  %v1003_v20 = vunpack.i.l.bf16 %v1002_v16 }
  0xcb   : > { %312 = vst.msk [vmem:[#allocation2 + $0x7] sm:$0x1] %vm311_vm4, %v994_v13  ;;  %v999_v17 = vunpack.i.h.bf16 %v997_v15  ;;  %v998_v18 = vunpack.i.l.bf16 %v997_v15 }
  0xcc   : > { %368 = vst.msk [vmem:[#allocation2] sm:$0xff] %vm367_vm5, %v1003_v20 }
  0xcd   : > { %313 = vst.msk [vmem:[#allocation2 + $0x7] sm:$0xfe] %vm309_vm3, %v998_v18  ;;  %v1012_v22 = vpop.permute.xlu1 %1011 }
  0xce   : > { %314 = vst.msk [vmem:[#allocation2 + $0xf] sm:$0x1] %vm311_vm4, %v999_v17  ;;  %v1007_v21 = vpop.permute.xlu0 %1006  ;;  %v1014_v25 = vunpack.i.h.bf16 %v1012_v22  ;;  %v1013_v26 = vunpack.i.l.bf16 %v1012_v22  ;;  %v666_v27 = vld [vmem:[#allocation2 + $0x10] sm:$0xff] }
  0xcf   : > { %369 = vst.msk [vmem:[#allocation2 + $0x8] sm:$0xff] %vm367_vm5, %v1004_v19  ;;  %v1009_v23 = vunpack.i.h.bf16 %v1007_v21  ;;  %v1008_v24 = vunpack.i.l.bf16 %v1007_v21 }
  0xd0   : > { %444 = vst.msk [vmem:[#allocation2 + $0x7] sm:$0xfe] %vm440_vm6, %v1013_v26 }
  0xd1   : > { %v667_v28 = vld [vmem:[#allocation2 + $0x18] sm:$0xff]  ;;  %441 = vst.msk [vmem:[#allocation2 - $0x1] sm:$0xfe] %vm440_vm6, %v1008_v24  ;;  %v1022_v30 = vpop.permute.xlu1 %1021 }
  0xd2   : > { %443 = vst.msk [vmem:[#allocation2 + $0x7] sm:$0x1] %vm442_vm7, %v1009_v23  ;;  %445 = vst.msk [vmem:[#allocation2 + $0xf] sm:$0x1] %vm442_vm7, %v1014_v25  ;;  %v673_v29 = vpack.c.bf16 %v667_v28, %v666_v27  ;;  %v1017_v31 = vpop.permute.xlu0 %1016  ;;  %v1024_v34 = vunpack.i.h.bf16 %v1022_v30  ;;  %v1023_v35 = vunpack.i.l.bf16 %v1022_v30 }
  0xd3   : > { %v1019_v32 = vunpack.i.h.bf16 %v1017_v31  ;;  %v1018_v33 = vunpack.i.l.bf16 %v1017_v31 }
  0xd4   : > { %800 = vmatpush3.bf16.xpose.msra.mxu0 %v673_v29 }
  0xd5   : > { %801 = vmatprep.subr.bf16.mxu0 %v1054_v0  ;;  %485 = vst.msk [vmem:[#allocation2] sm:$0xff] %vm484_vm8, %v1018_v33  ;;  %486 = vst.msk [vmem:[#allocation2 + $0x8] sm:$0xff] %vm484_vm8, %v1019_v32  ;;  %v1032_v37 = vpop.permute.xlu1 %1031 }
  0xd6   : > { %544 = vst.msk [vmem:[#allocation2 - $0x1] sm:$0xfe] %vm543_vm9, %v1023_v35  ;;  %v1027_v36 = vpop.permute.xlu0 %1026  ;;  %v1034_v40 = vunpack.i.h.bf16 %v1032_v37  ;;  %v1033_v41 = vunpack.i.l.bf16 %v1032_v37 }
  0xd7   : > { %546 = vst.msk [vmem:[#allocation2 + $0x7] sm:$0x1] %vm545_vm10, %v1024_v34  ;;  %v1029_v38 = vunpack.i.h.bf16 %v1027_v36  ;;  %v1028_v39 = vunpack.i.l.bf16 %v1027_v36 }
  0xd8   : > { %588 = vst.msk [vmem:[#allocation2] sm:$0xff] %vm587_vm11, %v1033_v41 }
  0xd9   : > { %547 = vst.msk [vmem:[#allocation2 + $0x7] sm:$0xfe] %vm543_vm9, %v1028_v39  ;;  %v1042_v42 = vpop.permute.xlu1 %1041 }
  0xda   : > { %548 = vst.msk [vmem:[#allocation2 + $0xf] sm:$0x1] %vm545_vm10, %v1029_v38  ;;  %v1037_v0 = vpop.permute.xlu0 %1036  ;;  %v1044_v45 = vunpack.i.h.bf16 %v1042_v42  ;;  %v1043_v46 = vunpack.i.l.bf16 %v1042_v42 }
  0xdb   : > { %589 = vst.msk [vmem:[#allocation2 + $0x8] sm:$0xff] %vm587_vm11, %v1034_v40  ;;  %v1039_v43 = vunpack.i.h.bf16 %v1037_v0  ;;  %v1038_v44 = vunpack.i.l.bf16 %v1037_v0 }
  0xdc   : > { %650 = vst.msk [vmem:[#allocation2 + $0x7] sm:$0xfe] %vm646_vm12, %v1043_v46 }
  0xdd   : > { %647 = vst.msk [vmem:[#allocation2 - $0x1] sm:$0xfe] %vm646_vm12, %v1038_v44 }
  0xde   : > { %649 = vst.msk [vmem:[#allocation2 + $0x7] sm:$0x1] %vm648_vm13, %v1039_v43  ;;  %651 = vst.msk [vmem:[#allocation2 + $0xf] sm:$0x1] %vm648_vm13, %v1044_v45 }
  0xe5   : > { %v664_v47 = vld [vmem:[#allocation2] sm:$0xff]  ;;  %v665_v48 = vld [vmem:[#allocation2 + $0x8] sm:$0xff] }
  0xe6   : > { %v672_v49 = vpack.c.bf16 %v665_v48, %v664_v47 }
  0xe7   : > { %v681_v51 = vpop.permute.xlu0 %680 }
  0xe8   : > { %802 = vmatpush3.bf16.xpose.msra.mxu0 %v672_v49 }
  0xef   : > { %804 = vmatmul.mubr.bf16.vlgmr.msra.gmra.mxu0 %v676_v50 }
 0x1af   : > { %v717_v52 = vpop.f32.mrf.mxu0 }
 0x1b0   : > { %v718_v53 = vadd.f32 %v717_v52, %v681_v51 }
 0x1b1   : > { %v805_v54 = vpop.f32.mrf.mxu0 }
 0x1b2   : > { %v723_v55 = vmax.f32 %v718_v53, 0.0 }
 0x1b3   : > { %v720_v56 = vpop.f32.mrf.mxu0 }
 0x1b4   : > { %725 = vst.msk [vmem:[%s173_s6] sm:$0xff] %vm724_vm14, %v723_v55 }
 0x1b5   : > { %v806_v57 = vpop.f32.mrf.mxu0 }
 0x1b6 PF: > { %s13_s12 = sadd.s32 1, %s1052_s12  }
 0x1b7   : > { %p10_p5 = scmp.ge.s32.totalorder %s13_s12, 4  }
 0x1b9   :  { %12 = sbr.rel (!%p10_p5) target bundleno = 1 (0x1), region = 62 }

</bundles_post_ra>
